<compile_context>
chip_gen: v6e
topology: v6e:2x2x1
jax: 0.10.0
libtpu: 0.0.40
codegen_flags: <defaults>
</compile_context>

<pallas_src>
import functools

import jax
import jax.numpy as jnp
from jax.experimental import pallas as pl
from jax.experimental.pallas import tpu as pltpu


def _round_up(n, m):
    return ((n + m - 1) // m) * m


_VMEM_LIMIT_BYTES = 32 * 1024 * 1024   # explicit (v5e default scoped is 16 MiB)
_TILE_VMEM_BUDGET = 24 * 1024 * 1024   # headroom under the limit for scratch


def _pick_batch_tile(batch, in_w, out_w, weight_bytes):
    """Batch tile derived from a VMEM budget.

    Double-buffered footprint per step:
        2 * TB * (in_w + out_w) * 4 bytes   ([x|eps] in, packed out)
      + 2 * weight_bytes                    (resident weights, Buffered(2))
    """
    per_row = 2 * (in_w + out_w) * 4
    avail = _TILE_VMEM_BUDGET - 2 * weight_bytes
    tb_max = max(8, (avail // per_row) // 8 * 8)
    tb_max = min(tb_max, 2048)   # diminishing returns past ~2K rows per step

    b8 = _round_up(batch, 8)
    if b8 <= tb_max:
        # Small batch: one grid step (forcing 2 steps only adds prologue cost,
        # esp. on single-TC v5e).  Big-but-fitting batch: 2 parallel steps so
        # both v7x TensorCores get work.
        if b8 >= 1024:
            return max(8, _round_up(b8 // 2, 8))
        return b8
    return tb_max


def encoder_kernel(xe_ref, w1_ref, b1_ref, w23_ref, b23_ref, out_ref,
                   *, d_in, latent_dim):
    xe = xe_ref[...]                                     # (TB, in_w) = [x|eps|0]

    # Stage 1: FC_input + relu.  W1 has zero rows over the eps/pad lanes and
    # zero columns past hidden, so the whole lane-dense slab feeds the MXU.
    h = jnp.dot(xe, w1_ref[...], preferred_element_type=jnp.float32) + b1_ref[...]
    h = jnp.maximum(h, 0.0)                              # (TB, H_pad)

    # Stage 2: fused FC_mean || FC_var || zero-pad -> (TB, out_w - latent).
    mv = jnp.dot(h, w23_ref[...], preferred_element_type=jnp.float32) + b23_ref[...]

    mean = mv[:, :latent_dim]
    log_var = mv[:, latent_dim:2 * latent_dim]
    eps = xe[:, d_in:d_in + latent_dim]                  # static lane slice

    # Reparameterization: z = mean + exp(0.5*log_var) * eps, eps ~ U[0,1).
    z = mean + jnp.exp(0.5 * log_var) * eps

    # [z | mean | log_var | 0]: one lane-placement concat, one wide unmasked store.
    out_ref[...] = jnp.concatenate([z, mv], axis=-1)


def prepare_encoder_params(params):
    """One-time fusion + zero-padding of weights (hoisted out of per-call path).

    Layout produced:
      w1  : (in_w, h_pad)   rows [0:d_in] = W_in,  rest zero (eps / lane pad)
      b1  : (1, h_pad)
      w23 : (h_pad, mv_w)   cols [0:L]=W_mean, [L:2L]=W_var, rest zero
      b23 : (1, mv_w)
    Zero rows/cols contribute nothing, so numerics are identical.
    """
    d_in, hidden = params["w1"].shape
    latent = params["w2"].shape[1]

    in_w = _round_up(d_in + latent, 128)   # lane-dense [x | eps] input width
    h_pad = _round_up(hidden, 128)         # lane-dense hidden width
    out_w = _round_up(3 * latent, 128)     # lane-dense packed output width
    mv_w = out_w - latent                  # fused mean||var||pad width

    w1 = jnp.zeros((in_w, h_pad), jnp.float32).at[:d_in, :hidden].set(params["w1"])
    b1 = jnp.zeros((1, h_pad), jnp.float32).at[:, :hidden].set(params["b1"])

    w23 = (jnp.zeros((h_pad, mv_w), jnp.float32)
           .at[:hidden, :latent].set(params["w2"])
           .at[:hidden, latent:2 * latent].set(params["w3"]))
    b23 = (jnp.zeros((1, mv_w), jnp.float32)
           .at[:, :latent].set(params["b2"])
           .at[:, latent:2 * latent].set(params["b3"]))

    return {"w1": w1, "b1": b1, "w23": w23, "b23": b23}


@jax.jit
def encoder_forward(x, prep, eps):
    """x: (B, d_in) f32; eps: (B, latent) f32 ~ U[0,1); prep: prepared params."""
    B, d_in = x.shape
    latent = eps.shape[1]
    in_w, h_pad = prep["w1"].shape
    mv_w = prep["w23"].shape[1]
    out_w = mv_w + latent

    weight_bytes = 4 * (prep["w1"].size + prep["b1"].size +
                        prep["w23"].size + prep["b23"].size)
    tb = _pick_batch_tile(B, in_w, out_w, weight_bytes)
    b_pad = _round_up(B, tb)

    # Single lane-dense [x | eps | 0] input slab: eps no longer needs its own
    # narrow 16-lane DMA stream / double buffer.
    xe = jnp.concatenate([x, eps], axis=1)
    xe = jnp.pad(xe, ((0, b_pad - B), (0, in_w - (d_in + latent))))

    kernel = functools.partial(encoder_kernel, d_in=d_in, latent_dim=latent)

    grid_spec = pltpu.PrefetchScalarGridSpec(
        num_scalar_prefetch=0,
        grid=(b_pad // tb,),
        in_specs=[
            pl.BlockSpec((tb, in_w), lambda i: (i, 0)),      # [x|eps] pipelined
            pl.BlockSpec((in_w, h_pad), lambda i: (0, 0)),   # W1      resident
            pl.BlockSpec((1, h_pad), lambda i: (0, 0)),      # b1      resident
            pl.BlockSpec((h_pad, mv_w), lambda i: (0, 0)),   # W_mean||W_var||0
            pl.BlockSpec((1, mv_w), lambda i: (0, 0)),       # b_mean||b_var||0
        ],
        out_specs=pl.BlockSpec((tb, out_w), lambda i: (i, 0)),
    )

    packed = pl.pallas_call(
        kernel,
        out_shape=jax.ShapeDtypeStruct((b_pad, out_w), jnp.float32),
        grid_spec=grid_spec,
        compiler_params=pltpu.CompilerParams(
            dimension_semantics=("parallel",),
            vmem_limit_bytes=_VMEM_LIMIT_BYTES),
    )(xe, prep["w1"], prep["b1"], prep["w23"], prep["b23"])

    z = packed[:B, :latent]
    mean = packed[:B, latent:2 * latent]
    log_var = packed[:B, 2 * latent:3 * latent]
    return z, mean, log_var


def init_params(key, input_dim, hidden_dim, latent_dim):
    """PyTorch-style init (uniform(-1/sqrt(fan_in), 1/sqrt(fan_in))).
    Weights stored as (in_features, out_features) — pre-transposed relative to
    nn.Linear's (out, in) storage — so the kernel does plain `x @ W`."""
    ks = jax.random.split(key, 6)

    def linear(kw, kb, fan_in, fan_out):
        bound = 1.0 / jnp.sqrt(jnp.float32(fan_in))
        w = jax.random.uniform(kw, (fan_in, fan_out), jnp.float32, -bound, bound)
        b = jax.random.uniform(kb, (1, fan_out), jnp.float32, -bound, bound)
        return w, b

    w1, b1 = linear(ks[0], ks[1], input_dim, hidden_dim)   # FC_input
    w2, b2 = linear(ks[2], ks[3], hidden_dim, latent_dim)  # FC_mean
    w3, b3 = linear(ks[4], ks[5], hidden_dim, latent_dim)  # FC_var
    return {"w1": w1, "b1": b1, "w2": w2, "b2": b2, "w3": w3, "b3": b3}


def encoder_ref(x, params, eps):
    """Pure-JAX reference (unfused, unpadded) for correctness checking."""
    h = jnp.maximum(x @ params["w1"] + params["b1"], 0.0)
    mean = h @ params["w2"] + params["b2"]
    log_var = h @ params["w3"] + params["b3"]
    std = jnp.exp(0.5 * log_var)
    z = mean + std * eps
    return z, mean, log_var


if __name__ == "__main__":
    # Small shapes consistent with the module's forward (flattened-image MLP VAE).
    B, input_dim, hidden_dim, latent_dim = 64, 64, 32, 16

    key = jax.random.PRNGKey(0)
    k_params, k_x, k_eps = jax.random.split(key, 3)

    params = init_params(k_params, input_dim, hidden_dim, latent_dim)
    prep = prepare_encoder_params(params)          # one-time weight fusion/pad

    x = jax.random.normal(k_x, (B, input_dim), jnp.float32)
    # torch.rand_like -> uniform [0, 1)  (as written in the source module;
    # note standard VAEs usually use randn_like — we follow the spec).
    eps = jax.random.uniform(k_eps, (B, latent_dim), jnp.float32)

    z, mean, log_var = encoder_forward(x, prep, eps)
    jax.block_until_ready((z, mean, log_var))

    z_r, mean_r, logvar_r = encoder_ref(x, params, eps)
    assert z.shape == (B, latent_dim)
    assert mean.shape == (B, latent_dim)
    assert log_var.shape == (B, latent_dim)
    assert jnp.allclose(z, z_r, atol=1e-5, rtol=1e-5)
    assert jnp.allclose(mean, mean_r, atol=1e-5, rtol=1e-5)
    assert jnp.allclose(log_var, logvar_r, atol=1e-5, rtol=1e-5)

    print("KERNEL_OK")
</pallas_src>

<mosaic_0001>
module attributes {stable_mosaic.version = 11 : i64} {
  func.func @encoder_kernel(%arg0: i32, %arg1: memref<64x128xf32, #tpu.memory_space<vmem>>, %arg2: memref<128x128xf32, #tpu.memory_space<vmem>>, %arg3: memref<1x128xf32, #tpu.memory_space<vmem>>, %arg4: memref<128x112xf32, #tpu.memory_space<vmem>>, %arg5: memref<1x112xf32, #tpu.memory_space<vmem>>, %arg6: memref<64x128xf32, #tpu.memory_space<vmem>>) attributes {dimension_semantics = [#tpu.dimension_semantics<parallel>], iteration_bounds = array<i64: 1>, scalar_prefetch = 0 : i64, scratch_operands = 0 : i64, tpu.core_type = #tpu.core_type<tc>, window_params = [{transform_indices = @transform_0, window_bounds = array<i64: 64, 128>}, {pipeline_mode = #tpu.pipeline_mode<synchronous>, transform_indices = @transform_1, window_bounds = array<i64: 128, 128>}, {pipeline_mode = #tpu.pipeline_mode<synchronous>, transform_indices = @transform_2, window_bounds = array<i64: 1, 128>}, {pipeline_mode = #tpu.pipeline_mode<synchronous>, transform_indices = @transform_3, window_bounds = array<i64: 128, 112>}, {pipeline_mode = #tpu.pipeline_mode<synchronous>, transform_indices = @transform_4, window_bounds = array<i64: 1, 112>}, {transform_indices = @transform_5, window_bounds = array<i64: 64, 128>}]} {
    %c0 = arith.constant 0 : index
    %c0_0 = arith.constant 0 : index
    %0 = vector.load %arg1[%c0, %c0_0] : memref<64x128xf32, #tpu.memory_space<vmem>>, vector<64x128xf32>
    %c0_1 = arith.constant 0 : index
    %c0_2 = arith.constant 0 : index
    %1 = vector.load %arg2[%c0_1, %c0_2] : memref<128x128xf32, #tpu.memory_space<vmem>>, vector<128x128xf32>
    %cst = arith.constant dense<0.000000e+00> : vector<64x128xf32>
    %2 = tpu.matmul %0, %1, %cst {dimension_numbers = #tpu.dot_dimension_numbers<[1], [0], [0], [1], [0, 0, 1, 1], [], []>} : vector<64x128xf32>, vector<128x128xf32>, vector<64x128xf32> -> vector<64x128xf32>
    %c0_3 = arith.constant 0 : index
    %c0_4 = arith.constant 0 : index
    %3 = vector.load %arg3[%c0_3, %c0_4] : memref<1x128xf32, #tpu.memory_space<vmem>>, vector<1x128xf32>
    %4 = vector.broadcast %3 : vector<1x128xf32> to vector<64x128xf32>
    %5 = arith.addf %2, %4 : vector<64x128xf32>
    %cst_5 = arith.constant 0.000000e+00 : f32
    %6 = vector.broadcast %cst_5 : f32 to vector<64x128xf32>
    %7 = arith.maximumf %5, %6 : vector<64x128xf32>
    %c0_6 = arith.constant 0 : index
    %c0_7 = arith.constant 0 : index
    %8 = vector.load %arg4[%c0_6, %c0_7] : memref<128x112xf32, #tpu.memory_space<vmem>>, vector<128x112xf32>
    %cst_8 = arith.constant dense<0.000000e+00> : vector<64x112xf32>
    %9 = tpu.matmul %7, %8, %cst_8 {dimension_numbers = #tpu.dot_dimension_numbers<[1], [0], [0], [1], [0, 0, 1, 1], [], []>} : vector<64x128xf32>, vector<128x112xf32>, vector<64x112xf32> -> vector<64x112xf32>
    %c0_9 = arith.constant 0 : index
    %c0_10 = arith.constant 0 : index
    %10 = vector.load %arg5[%c0_9, %c0_10] : memref<1x112xf32, #tpu.memory_space<vmem>>, vector<1x112xf32>
    %11 = vector.broadcast %10 : vector<1x112xf32> to vector<64x112xf32>
    %12 = arith.addf %9, %11 : vector<64x112xf32>
    %13 = vector.extract_strided_slice %12 {offsets = [0, 0], sizes = [64, 16], strides = [1, 1]} : vector<64x112xf32> to vector<64x16xf32>
    %14 = vector.extract_strided_slice %12 {offsets = [0, 16], sizes = [64, 16], strides = [1, 1]} : vector<64x112xf32> to vector<64x16xf32>
    %15 = vector.extract_strided_slice %0 {offsets = [0, 64], sizes = [64, 16], strides = [1, 1]} : vector<64x128xf32> to vector<64x16xf32>
    %cst_11 = arith.constant 5.000000e-01 : f32
    %16 = vector.broadcast %cst_11 : f32 to vector<64x16xf32>
    %17 = arith.mulf %16, %14 : vector<64x16xf32>
    %18 = math.exp %17 : vector<64x16xf32>
    %19 = arith.mulf %18, %15 : vector<64x16xf32>
    %20 = arith.addf %13, %19 : vector<64x16xf32>
    %21 = tpu.concatenate %20, %12 in 1 : vector<64x16xf32>, vector<64x112xf32> -> vector<64x128xf32>
    %c0_12 = arith.constant 0 : index
    %c0_13 = arith.constant 0 : index
    %22 = vector.load %arg6[%c0_12, %c0_13] : memref<64x128xf32, #tpu.memory_space<vmem>>, vector<64x128xf32>
    tpu.vector_store %arg6[%c0_12, %c0_13], %21 {strides = array<i32>} : memref<64x128xf32, #tpu.memory_space<vmem>>, vector<64x128xf32>,
    return
  }
  func.func @transform_0(%arg0: i32) -> (i32, i32) {
    %c0_i32 = arith.constant 0 : i32
    %c0_i32_0 = arith.constant 0 : i32
    return %arg0, %c0_i32 : i32, i32
  }
  func.func @transform_1(%arg0: i32) -> (i32, i32) {
    %c0_i32 = arith.constant 0 : i32
    %c0_i32_0 = arith.constant 0 : i32
    %c0_i32_1 = arith.constant 0 : i32
    return %c0_i32, %c0_i32_0 : i32, i32
  }
  func.func @transform_2(%arg0: i32) -> (i32, i32) {
    %c0_i32 = arith.constant 0 : i32
    %c0_i32_0 = arith.constant 0 : i32
    %c0_i32_1 = arith.constant 0 : i32
    return %c0_i32, %c0_i32_0 : i32, i32
  }
  func.func @transform_3(%arg0: i32) -> (i32, i32) {
    %c0_i32 = arith.constant 0 : i32
    %c0_i32_0 = arith.constant 0 : i32
    %c0_i32_1 = arith.constant 0 : i32
    return %c0_i32, %c0_i32_0 : i32, i32
  }
  func.func @transform_4(%arg0: i32) -> (i32, i32) {
    %c0_i32 = arith.constant 0 : i32
    %c0_i32_0 = arith.constant 0 : i32
    %c0_i32_1 = arith.constant 0 : i32
    return %c0_i32, %c0_i32_0 : i32, i32
  }
  func.func @transform_5(%arg0: i32) -> (i32, i32) {
    %c0_i32 = arith.constant 0 : i32
    %c0_i32_0 = arith.constant 0 : i32
    return %arg0, %c0_i32 : i32, i32
  }
}

</mosaic_0001>

<bundles_post_ra>
// kernel: encoder_forward.1
= control target key start
LH: loop header
LB: loop body
LE: loop exit
PB: predicated region body
PF: predicated region fallthrough
CT: control target
= control target key end

     0   :  { %s606_s21 = smov 80   ;;  %s607_s24 = smov 16   ;;  %vm428_vm0 = vcmask 130048   ;;  %s849_s1 = inlined_call_operand.vmem [shape: f32[128,128], index: 1, kind: input, shape index: {}]   ;;  %s850_s0 = inlined_call_operand.vmem [shape: f32[64,128], index: 0, kind: input, shape index: {}]   ;;  %s851_s3 = inlined_call_operand.vmem [shape: f32[128,112], index: 3, kind: input, shape index: {}]   ;;  %s852_s2 = inlined_call_operand.vmem [shape: f32[1,128], index: 2, kind: input, shape index: {}]   ;;  %s853_s4 = inlined_call_operand.vmem [shape: f32[1,112], index: 4, kind: input, shape index: {}]   ;;  %s854_s5 = inlined_call_operand.vmem [shape: f32[64,128], index: 5, kind: output, shape index: {}]  }
   0x1   :  { %v43_v0 = vld [vmem:[%s849_s1 + $0x78] sm:$0xff]  ;;  %v42_v1 = vld [vmem:[%s849_s1 + $0x70] sm:$0xff]  ;;  %v41_v2 = vld [vmem:[%s849_s1 + $0x68] sm:$0xff] }
   0x2   :  { %499 = vmatprep.subr.mxu0 %v43_v0  ;;  %v40_v3 = vld [vmem:[%s849_s1 + $0x60] sm:$0xff]  ;;  %v39_v5 = vld [vmem:[%s849_s1 + $0x58] sm:$0xff]  ;;  %v38_v6 = vld [vmem:[%s849_s1 + $0x50] sm:$0xff] }
   0x3   :  { %500 = vmatpush3.msra.mxu0 %v43_v0  ;;  %v654_v4 = vld [vmem:[%s850_s0] sm:$0xff]  ;;  %v179_v7 = vld [vmem:[%s851_s3 + $0x78] sm:$0xff]  ;;  %v178_v8 = vld [vmem:[%s851_s3 + $0x70] sm:$0xff] }
   0x4   :  { %501 = vmatprep.subr.mxu0 %v42_v1  ;;  %531 = vmatprep.mubr.f32.mxu0 %v654_v4  ;;  %v37_v9 = vld [vmem:[%s849_s1 + $0x48] sm:$0xff]  ;;  %v36_v11 = vld [vmem:[%s849_s1 + $0x40] sm:$0xff]  ;;  %v35_v13 = vld [vmem:[%s849_s1 + $0x38] sm:$0xff] }
   0x5   :  { %502 = vmatpush3.msra.mxu0 %v42_v1  ;;  %543 = vmatprep.subr.mxu1 %v179_v7  ;;  %v177_v10 = vld [vmem:[%s851_s3 + $0x68] sm:$0xff]  ;;  %v176_v12 = vld [vmem:[%s851_s3 + $0x60] sm:$0xff]  ;;  %v175_v14 = vld [vmem:[%s851_s3 + $0x58] sm:$0xff] }
   0x6   :  { %503 = vmatprep.subr.mxu0 %v41_v2  ;;  %544 = vmatpush3.msra.mxu1 %v179_v7  ;;  %v34_v15 = vld [vmem:[%s849_s1 + $0x30] sm:$0xff]  ;;  %v33_v17 = vld [vmem:[%s849_s1 + $0x28] sm:$0xff]  ;;  %v32_v19 = vld [vmem:[%s849_s1 + $0x20] sm:$0xff] }
   0x7   :  { %504 = vmatpush3.msra.mxu0 %v41_v2  ;;  %545 = vmatprep.subr.mxu1 %v178_v8  ;;  %v174_v16 = vld [vmem:[%s851_s3 + $0x50] sm:$0xff]  ;;  %v173_v18 = vld [vmem:[%s851_s3 + $0x48] sm:$0xff]  ;;  %v172_v20 = vld [vmem:[%s851_s3 + $0x40] sm:$0xff] }
   0x8   :  { %505 = vmatprep.subr.mxu0 %v40_v3  ;;  %546 = vmatpush3.msra.mxu1 %v178_v8  ;;  %v31_v21 = vld [vmem:[%s849_s1 + $0x18] sm:$0xff]  ;;  %v30_v23 = vld [vmem:[%s849_s1 + $0x10] sm:$0xff]  ;;  %v29_v25 = vld [vmem:[%s849_s1 + $0x8] sm:$0xff] }
   0x9   :  { %506 = vmatpush3.msra.mxu0 %v40_v3  ;;  %547 = vmatprep.subr.mxu1 %v177_v10  ;;  %v171_v22 = vld [vmem:[%s851_s3 + $0x38] sm:$0xff]  ;;  %v170_v24 = vld [vmem:[%s851_s3 + $0x30] sm:$0xff]  ;;  %v169_v26 = vld [vmem:[%s851_s3 + $0x28] sm:$0xff] }
   0xa   :  { %507 = vmatprep.subr.mxu0 %v39_v5  ;;  %548 = vmatpush3.msra.mxu1 %v177_v10  ;;  %v28_v27 = vld [vmem:[%s849_s1] sm:$0xff]  ;;  %v21_v29 = vld [vmem:[%s850_s0 + $0x8] sm:$0xff]  ;;  %v22_v30 = vld [vmem:[%s850_s0 + $0x10] sm:$0xff] }
   0xb   :  { %508 = vmatpush3.msra.mxu0 %v39_v5  ;;  %549 = vmatprep.subr.mxu1 %v176_v12  ;;  %v168_v28 = vld [vmem:[%s851_s3 + $0x20] sm:$0xff]  ;;  %v23_v31 = vld [vmem:[%s850_s0 + $0x18] sm:$0xff]  ;;  %v25_v33 = vld [vmem:[%s850_s0 + $0x28] sm:$0xff] }
   0xc   :  { %509 = vmatprep.subr.mxu0 %v38_v6  ;;  %550 = vmatpush3.msra.mxu1 %v176_v12  ;;  %v24_v32 = vld [vmem:[%s850_s0 + $0x20] sm:$0xff]  ;;  %v26_v34 = vld [vmem:[%s850_s0 + $0x30] sm:$0xff]  ;;  %v27_v35 = vld [vmem:[%s850_s0 + $0x38] sm:$0xff] }
   0xd   :  { %510 = vmatpush3.msra.mxu0 %v38_v6  ;;  %551 = vmatprep.subr.mxu1 %v175_v14  ;;  %v167_v36 = vld [vmem:[%s851_s3 + $0x18] sm:$0xff]  ;;  %v166_v37 = vld [vmem:[%s851_s3 + $0x10] sm:$0xff]  ;;  %v165_v38 = vld [vmem:[%s851_s3 + $0x8] sm:$0xff] }
   0xe   :  { %511 = vmatprep.subr.mxu0 %v37_v9  ;;  %552 = vmatpush3.msra.mxu1 %v175_v14  ;;  %v164_v39 = vld [vmem:[%s851_s3] sm:$0xff] }
   0xf   :  { %512 = vmatpush3.msra.mxu0 %v37_v9  ;;  %553 = vmatprep.subr.mxu1 %v174_v16  ;;  %v449_v40 = vld [vmem:[%s852_s2] ss:$0 sm:$0xff] }
  0x10   :  { %513 = vmatprep.subr.mxu0 %v36_v11  ;;  %554 = vmatpush3.msra.mxu1 %v174_v16  ;;  %v450_v1 = vld [vmem:[%s853_s4] ss:$0 sm:$0xff]  ;;  %s608_s4 = smov 112  }
  0x11   :  { %514 = vmatpush3.msra.mxu0 %v36_v11  ;;  %555 = vmatprep.subr.mxu1 %v173_v18 }
  0x12   :  { %515 = vmatprep.subr.mxu0 %v35_v13  ;;  %556 = vmatpush3.msra.mxu1 %v173_v18 }
  0x13   :  { %516 = vmatpush3.msra.mxu0 %v35_v13  ;;  %557 = vmatprep.subr.mxu1 %v172_v20 }
  0x14   :  { %517 = vmatprep.subr.mxu0 %v34_v15  ;;  %558 = vmatpush3.msra.mxu1 %v172_v20 }
  0x15   :  { %518 = vmatpush3.msra.mxu0 %v34_v15  ;;  %559 = vmatprep.subr.mxu1 %v171_v22 }
  0x16   :  { %519 = vmatprep.subr.mxu0 %v33_v17  ;;  %560 = vmatpush3.msra.mxu1 %v171_v22 }
  0x17   :  { %520 = vmatpush3.msra.mxu0 %v33_v17  ;;  %561 = vmatprep.subr.mxu1 %v170_v24 }
  0x18   :  { %521 = vmatprep.subr.mxu0 %v32_v19  ;;  %562 = vmatpush3.msra.mxu1 %v170_v24 }
  0x19   :  { %522 = vmatpush3.msra.mxu0 %v32_v19  ;;  %563 = vmatprep.subr.mxu1 %v169_v26 }
  0x1a   :  { %523 = vmatprep.subr.mxu0 %v31_v21  ;;  %564 = vmatpush3.msra.mxu1 %v169_v26 }
  0x1b   :  { %524 = vmatpush3.msra.mxu0 %v31_v21  ;;  %565 = vmatprep.subr.mxu1 %v168_v28 }
  0x1c   :  { %525 = vmatprep.subr.mxu0 %v30_v23  ;;  %566 = vmatpush3.msra.mxu1 %v168_v28 }
  0x1d   :  { %526 = vmatpush3.msra.mxu0 %v30_v23  ;;  %567 = vmatprep.subr.mxu1 %v167_v36 }
  0x1e   :  { %527 = vmatprep.subr.mxu0 %v29_v25  ;;  %568 = vmatpush3.msra.mxu1 %v167_v36 }
  0x1f   :  { %528 = vmatpush3.msra.mxu0 %v29_v25  ;;  %569 = vmatprep.subr.mxu1 %v166_v37 }
  0x20   :  { %529 = vmatprep.subr.mxu0 %v28_v27  ;;  %570 = vmatpush3.msra.mxu1 %v166_v37 }
  0x21   :  { %530 = vmatpush3.msra.mxu0 %v28_v27  ;;  %571 = vmatprep.subr.mxu1 %v165_v38 }
  0x22   :  { %532 = vmatmul.mubr.f32.vlgmr.msra.gmra.mxu0 %v21_v29  ;;  %572 = vmatpush3.msra.mxu1 %v165_v38 }
  0x23   :  { %534 = vmatprep.mubr.f32.mxu0 %v22_v30  ;;  %573 = vmatprep.subr.mxu1 %v164_v39 }
  0x24   :  { %574 = vmatpush3.msra.mxu1 %v164_v39  ;;  %324 = vrot.lane.b32.xlu0 %v654_v4, %s606_s21 }
  0x25   :  { %328 = vrot.lane.b32.xlu1 %v22_v30, %s606_s21 }
  0x26   :  { %535 = vmatmul.mubr.f32.gmra.mxu0 %v23_v31 }
  0x27   :  { %537 = vmatprep.mubr.f32.mxu0 %v24_v32 }
  0x28   :  { %326 = vrot.lane.b32.xlu0 %v21_v29, %s606_s21 }
  0x29   :  { %330 = vrot.lane.b32.xlu1 %v23_v31, %s606_s21 }
  0x2a   :  { %538 = vmatmul.mubr.f32.gmra.mxu0 %v25_v33 }
  0x2b   :  { %540 = vmatprep.mubr.f32.mxu0 %v26_v34 }
  0x2c   :  { %332 = vrot.lane.b32.xlu0 %v24_v32, %s606_s21 }
  0x2d   :  { %334 = vrot.lane.b32.xlu1 %v25_v33, %s606_s21 }
  0x2e   :  { %541 = vmatmul.mubr.f32.gmra.mxu0 %v27_v35 }
  0x30   :  { %336 = vrot.lane.b32.xlu0 %v26_v34, %s606_s21 }
  0x31   :  { %338 = vrot.lane.b32.xlu1 %v27_v35, %s606_s21 }
  0x96   :  { %v325_v23 = vpop.permute.xlu0 %324 }
  0x97   :  { %v329_v25 = vpop.permute.xlu1 %328 }
  0x9a   :  { %v327_v35 = vpop.permute.xlu0 %326 }
  0x9b   :  { %v331_v36 = vpop.permute.xlu1 %330 }
  0xe2   :  { %v533_v41 = vpop.f32.mrf.mxu0 }
  0xe3   :  { %v123_v42 = vadd.f32 %v533_v41, %v449_v40 }
  0xe4   :  { %v117_v43 = vpop.f32.mrf.mxu0 }
  0xe5   :  { %v118_v44 = vadd.f32 %v449_v40, %v117_v43  ;;  %v157_v47 = vmax.f32 %v123_v42, 0.0  ;;  %v335_v43 = vpop.permute.xlu1 %334 }
  0xe6   :  { %v536_v45 = vpop.f32.mrf.mxu0 }
  0xe7   :  { %v156_v46 = vmax.f32 %v118_v44, 0.0  ;;  %v133_v48 = vadd.f32 %v536_v45, %v449_v40 }
  0xe8   :  { %v127_v49 = vpop.f32.mrf.mxu0 }
  0xe9   :  { %v128_v50 = vadd.f32 %v449_v40, %v127_v49  ;;  %575 = vmatprep.mubr.f32.mxu1 %v156_v46  ;;  %v159_v53 = vmax.f32 %v133_v48, 0.0  ;;  %v333_v46 = vpop.permute.xlu0 %332 }
  0xea   :  { %v539_v51 = vpop.f32.mrf.mxu0  ;;  %576 = vmatmul.mubr.f32.vlgmr.msra.gmra.mxu1 %v157_v47 }
  0xeb   :  { %v158_v52 = vmax.f32 %v128_v50, 0.0  ;;  %v143_v54 = vadd.f32 %v539_v51, %v449_v40  ;;  %v339_v51 = vpop.permute.xlu1 %338 }
  0xec   :  { %v137_v55 = vpop.f32.mrf.mxu0 }
  0xed   :  { %v138_v56 = vadd.f32 %v449_v40, %v137_v55  ;;  %578 = vmatprep.mubr.f32.mxu1 %v158_v52  ;;  %v161_v59 = vmax.f32 %v143_v54, 0.0  ;;  %v337_v54 = vpop.permute.xlu0 %336 }
  0xee   :  { %v542_v57 = vpop.f32.mrf.mxu0  ;;  %579 = vmatmul.mubr.f32.gmra.mxu1 %v159_v53 }
  0xef   :  { %v160_v58 = vmax.f32 %v138_v56, 0.0  ;;  %v153_v60 = vadd.f32 %v542_v57, %v449_v40 }
  0xf0   :  { %v147_v61 = vpop.f32.mrf.mxu0 }
  0xf1   :  { %v148_v62 = vadd.f32 %v449_v40, %v147_v61  ;;  %581 = vmatprep.mubr.f32.mxu1 %v160_v58  ;;  %v163_v0 = vmax.f32 %v153_v60, 0.0 }
  0xf2   :  { %582 = vmatmul.mubr.f32.gmra.mxu1 %v161_v59 }
  0xf3   :  { %v162_v63 = vmax.f32 %v148_v62, 0.0 }
  0xf5   :  { %584 = vmatprep.mubr.f32.mxu1 %v162_v63 }
  0xf6   :  { %585 = vmatmul.mubr.f32.gmra.mxu1 %v163_v0 }
 0x1aa   :  { %v577_v2 = vpop.f32.mrf.mxu1 }
 0x1ab   :  { %v769_v3 = vadd.f32 %v577_v2, %v450_v1 }
 0x1ac   :  { %v253_v4 = vpop.f32.mrf.mxu1 }
 0x1ad   :  { %v293_v5 = vmul.f32 0.5, %v769_v3  ;;  %v772_v6 = vadd.f32 %v450_v1, %v253_v4  ;;  %406 = vrot.lane.b32.xlu1 %v769_v3, %s607_s24 }
 0x1ae   :  { %v580_v7 = vpop.f32.mrf.mxu1 }
 0x1af   :  { %v302_v8 = vmul.f32 1.442695, %v293_v5  ;;  %v292_v9 = vmul.f32 0.5, %v772_v6  ;;  %v777_v10 = vadd.f32 %v580_v7, %v450_v1  ;;  %404 = vrot.lane.b32.xlu0 %v772_v6, %s607_s24 }
 0x1b0   :  { %v263_v11 = vpop.f32.mrf.mxu1 }
 0x1b1   :  { %590 = vpow2.f32 %v302_v8  ;;  %v300_v12 = vmul.f32 1.442695, %v292_v9  ;;  %v295_v13 = vmul.f32 0.5, %v777_v10  ;;  %v782_v14 = vadd.f32 %v450_v1, %v263_v11  ;;  %410 = vrot.lane.b32.xlu1 %v777_v10, %s607_s24 }
 0x1b2   :  { %v583_v15 = vpop.f32.mrf.mxu1 }
 0x1b3   :  { %592 = vpow2.f32 %v300_v12  ;;  %v306_v16 = vmul.f32 1.442695, %v295_v13  ;;  %v294_v17 = vmul.f32 0.5, %v782_v14  ;;  %v787_v18 = vadd.f32 %v583_v15, %v450_v1  ;;  %408 = vrot.lane.b32.xlu0 %v782_v14, %s607_s24 }
 0x1b4   :  { %v273_v19 = vpop.f32.mrf.mxu1 }
 0x1b5   :  { %594 = vpow2.f32 %v306_v16  ;;  %v304_v20 = vmul.f32 1.442695, %v294_v17  ;;  %v297_v21 = vmul.f32 0.5, %v787_v18  ;;  %v792_v22 = vadd.f32 %v450_v1, %v273_v19  ;;  %414 = vrot.lane.b32.xlu1 %v787_v18, %s607_s24 }
 0x1b6   :  { %v586_v24 = vpop.f32.mrf.mxu1 }
 0x1b7   :  { %596 = vpow2.f32 %v304_v20  ;;  %v310_v26 = vmul.f32 1.442695, %v297_v21  ;;  %v296_v27 = vmul.f32 0.5, %v792_v22  ;;  %v797_v28 = vadd.f32 %v586_v24, %v450_v1  ;;  %412 = vrot.lane.b32.xlu0 %v792_v22, %s607_s24 }
 0x1b8   :  { %v283_v29 = vpop.f32.mrf.mxu1 }
 0x1b9   :  { %598 = vpow2.f32 %v310_v26  ;;  %v308_v30 = vmul.f32 1.442695, %v296_v27  ;;  %v299_v31 = vmul.f32 0.5, %v797_v28  ;;  %v802_v32 = vadd.f32 %v450_v1, %v283_v29 }
 0x1bb   :  { %600 = vpow2.f32 %v308_v30  ;;  %v314_v33 = vmul.f32 1.442695, %v299_v31  ;;  %v298_v34 = vmul.f32 0.5, %v802_v32 }
 0x1bd   :  { %602 = vpow2.f32 %v314_v33  ;;  %v312_v37 = vmul.f32 1.442695, %v298_v34 }
 0x1be   :  { %v591_v38 = vpop.eup %590 }
 0x1bf   :  { %604 = vpow2.f32 %v312_v37  ;;  %v349_v39 = vmul.f32 %v591_v38, %v327_v35 }
 0x1c0   :  { %v593_v40 = vpop.eup %592 }
 0x1c1   :  { %v348_v41 = vmul.f32 %v593_v40, %v325_v23  ;;  %366 = vrot.lane.b32.xlu1 %v349_v39, %s608_s4 }
 0x1c2   :  { %v595_v42 = vpop.eup %594 }
 0x1c3   :  { %v351_v44 = vmul.f32 %v595_v42, %v331_v36  ;;  %364 = vrot.lane.b32.xlu0 %v348_v41, %s608_s4 }
 0x1c4   :  { %v597_v45 = vpop.eup %596 }
 0x1c5   :  { %v350_v47 = vmul.f32 %v597_v45, %v329_v25  ;;  %370 = vrot.lane.b32.xlu1 %v351_v44, %s608_s4 }
 0x1c6   :  { %v599_v48 = vpop.eup %598 }
 0x1c7   :  { %v353_v49 = vmul.f32 %v599_v48, %v335_v43  ;;  %368 = vrot.lane.b32.xlu0 %v350_v47, %s608_s4 }
 0x1c8   :  { %v601_v50 = vpop.eup %600 }
 0x1c9   :  { %v352_v52 = vmul.f32 %v601_v50, %v333_v46  ;;  %374 = vrot.lane.b32.xlu1 %v353_v49, %s608_s4 }
 0x1ca   :  { %v603_v53 = vpop.eup %602 }
 0x1cb   :  { %v355_v55 = vmul.f32 %v603_v53, %v339_v51  ;;  %372 = vrot.lane.b32.xlu0 %v352_v52, %s608_s4 }
 0x1cc   :  { %v605_v56 = vpop.eup %604 }
 0x1cd   :  { %v354_v57 = vmul.f32 %v605_v56, %v337_v54  ;;  %378 = vrot.lane.b32.xlu1 %v355_v55, %s608_s4 }
 0x1cf   :  { %376 = vrot.lane.b32.xlu0 %v354_v57, %s608_s4 }
 0x1d1   :  { %418 = vrot.lane.b32.xlu1 %v797_v28, %s607_s24 }
 0x1d3   :  { %416 = vrot.lane.b32.xlu0 %v802_v32, %s607_s24 }
 0x21f   :  { %v407_v58 = vpop.permute.xlu1 %406 }
 0x221   :  { %v405_v59 = vpop.permute.xlu0 %404 }
 0x223   :  { %v411_v60 = vpop.permute.xlu1 %410 }
 0x225   :  { %v409_v61 = vpop.permute.xlu0 %408 }
 0x227   :  { %v415_v62 = vpop.permute.xlu1 %414 }
 0x229   :  { %v413_v63 = vpop.permute.xlu0 %412 }
 0x233   :  { %v367_v0 = vpop.permute.xlu1 %366 }
 0x234   :  { %v389_v1 = vadd.f32 %v367_v0, %v769_v3 }
 0x235   :  { %v365_v2 = vpop.permute.xlu0 %364 }
 0x236   :  { %v430_v4 = vsel %vm428_vm0, %v389_v1, %v407_v58  ;;  %v388_v5 = vadd.f32 %v365_v2, %v772_v6 }
 0x237   :  { %438 = vst [vmem:[%s854_s5 + $0x8] sm:$0xff] %v430_v4  ;;  %v371_v7 = vpop.permute.xlu1 %370 }
 0x238   :  { %v429_v8 = vsel %vm428_vm0, %v388_v5, %v405_v59  ;;  %v391_v9 = vadd.f32 %v371_v7, %v777_v10 }
 0x239   :  { %437 = vst [vmem:[%s854_s5] sm:$0xff] %v429_v8  ;;  %v369_v11 = vpop.permute.xlu0 %368 }
 0x23a   :  { %v432_v3 = vsel %vm428_vm0, %v391_v9, %v411_v60  ;;  %v390_v12 = vadd.f32 %v369_v11, %v782_v14 }
 0x23b   :  { %440 = vst [vmem:[%s854_s5 + $0x18] sm:$0xff] %v432_v3  ;;  %v375_v6 = vpop.permute.xlu1 %374 }
 0x23c   :  { %v431_v13 = vsel %vm428_vm0, %v390_v12, %v409_v61  ;;  %v393_v15 = vadd.f32 %v375_v6, %v787_v18 }
 0x23d   :  { %439 = vst [vmem:[%s854_s5 + $0x10] sm:$0xff] %v431_v13  ;;  %v373_v10 = vpop.permute.xlu0 %372 }
 0x23e   :  { %v434_v16 = vsel %vm428_vm0, %v393_v15, %v415_v62  ;;  %v392_v17 = vadd.f32 %v373_v10, %v792_v22 }
 0x23f   :  { %442 = vst [vmem:[%s854_s5 + $0x28] sm:$0xff] %v434_v16  ;;  %v379_v14 = vpop.permute.xlu1 %378 }
 0x240   :  { %v433_v19 = vsel %vm428_vm0, %v392_v17, %v413_v63  ;;  %v395_v20 = vadd.f32 %v379_v14, %v797_v28 }
 0x241   :  { %441 = vst [vmem:[%s854_s5 + $0x20] sm:$0xff] %v433_v19  ;;  %v377_v18 = vpop.permute.xlu0 %376 }
 0x242   :  { %v394_v23 = vadd.f32 %v377_v18, %v802_v32 }
 0x243   :  { %v419_v21 = vpop.permute.xlu1 %418 }
 0x244   :  { %v436_v24 = vsel %vm428_vm0, %v395_v20, %v419_v21 }
 0x245   :  { %444 = vst [vmem:[%s854_s5 + $0x38] sm:$0xff] %v436_v24  ;;  %v417_v22 = vpop.permute.xlu0 %416 }
 0x246   :  { %v435_v25 = vsel %vm428_vm0, %v394_v23, %v417_v22 }
 0x247   :  { %443 = vst [vmem:[%s854_s5 + $0x30] sm:$0xff] %v435_v25 }

</bundles_post_ra>
